<compile_context>
chip_gen: v7x
topology: tpu7x:2x2x1
jax: 0.10.0
libtpu: 0.0.40
codegen_flags: <defaults>
</compile_context>

<pallas_src>
import functools

import jax
import jax.numpy as jnp
from jax.experimental import pallas as pl
from jax.experimental.pallas import tpu as pltpu


def _round_up(v, k):
    return (v + k - 1) // k * k


def _tpu_budget():
    """(scoped vmem limit, streamed-input tile budget, tensorcores per chip).

    Falls back to the most conservative numbers (v7x: 64 MiB VMEM, unknown core
    count -> 1 TC, i.e. v5e/v6e behaviour) if the query is unavailable."""
    cap, cores = None, None
    try:
        info = pltpu.get_tpu_info()
        cap = getattr(info, "vmem_capacity_bytes", None)
        for attr in ("num_cores", "num_tensorcores", "tensorcores_per_chip",
                     "cores_per_chip"):
            v = getattr(info, attr, None)
            if isinstance(v, int) and v > 0:
                cores = v
                break
    except Exception:
        pass
    if not cap:
        cap = 64 * 1024 * 1024          # v7x per-TC VMEM: most conservative
    if not cores:
        cores = 1                        # assume single TC (v5e / v6e)
    vmem_limit = int(cap * 0.55)         # ~55% of physical: headroom for temps/out
    tile_budget = vmem_limit // 2        # budget for double-buffered input tiles
    return vmem_limit, tile_budget, cores


def _pick_batch_tile(B, max_bt, num_cores):
    """Largest divisor of B <= max_bt.  Only when >= 2 TensorCores are present
    do we additionally prefer a grid extent that splits evenly across cores
    (single-TC chips keep the largest tile: fewer grid steps)."""
    divs = [t for t in range(1, min(B, max_bt) + 1) if B % t == 0]
    if num_cores >= 2:
        pref = [t for t in divs if (B // t) % num_cores == 0]
        if pref:
            return max(pref)
    return max(divs)


def _pick_n_tile(n_pad, bt, d, m, tile_budget_bytes, cap=None):
    """Largest multiple of 128 dividing n_pad whose double-buffered streamed
    tiles fit the budget.  Tile bytes use (8,128)-padded dims: a (bt, d, nt)
    f32 tile occupies bt * round_up(d, 8) * nt * 4 bytes (nt is lane-dense)."""
    per_lane = 2 * bt * (_round_up(d, 8) + _round_up(m, 8)) * 4   # x2 = dbl buffer
    max_nt = max(128, (tile_budget_bytes // max(per_lane, 1)) // 128 * 128)
    if cap is not None:
        max_nt = min(max_nt, max(128, cap // 128 * 128))
    units = n_pad // 128
    best = 1
    for u in range(1, units + 1):
        if units % u == 0 and u * 128 <= max_nt:
            best = u
    return best * 128


# ---------------------------------------------------------------------------
# n_samples >= n_dim branch: normal equations via lane-dense transposed streams.
# ---------------------------------------------------------------------------
def _normal_eq_kernel(reg_ref, xt_ref, yt_ref, g_ref,
                      acc_xx, acc_xy, acc_sx, acc_sy, *, n_true):
    k = pl.program_id(1)

    @pl.when(k == 0)
    def _():
        acc_xx[...] = jnp.zeros_like(acc_xx)
        acc_xy[...] = jnp.zeros_like(acc_xy)
        acc_sx[...] = jnp.zeros_like(acc_sx)
        acc_sy[...] = jnp.zeros_like(acc_sy)

    xt = xt_ref[...]                                        # (bt, d, nt)  n lane-dense
    yt = yt_ref[...]                                        # (bt, m, nt)

    # Bias column folded analytically -> no per-step concat / zero-pad FLOPs.
    acc_xx[...] += jnp.einsum('bin,bjn->bij', xt, xt,
                              preferred_element_type=jnp.float32)
    acc_xy[...] += jnp.einsum('bin,bjn->bij', xt, yt,
                              preferred_element_type=jnp.float32)
    acc_sx[...] += jnp.sum(xt, axis=-1, keepdims=True)      # (bt, d, 1)  X^T @ 1
    acc_sy[...] += jnp.sum(yt, axis=-1, keepdims=True)      # (bt, m, 1)  Y^T @ 1

    @pl.when(k == pl.num_programs(1) - 1)
    def _():
        bt, d, _ = acc_xx.shape
        m = acc_xy.shape[-1]
        d1 = d + 1
        padw = g_ref.shape[-1]
        pad = padw - (d1 + m)
        reg = reg_ref[0, 0]

        xx = acc_xx[...]
        xy = acc_xy[...]
        sx = acc_sx[...]                                    # column orientation
        sy = acc_sy[...]
        sx_row = jnp.swapaxes(sx, 1, 2)                     # (bt, 1, d)
        sy_row = jnp.swapaxes(sy, 1, 2)                     # (bt, 1, m)
        cnt = jnp.full((bt, 1, 1), n_true, dtype=jnp.float32)   # 1^T 1 (true n)

        top = [xx, sx, xy]                                  # rows 0..d-1 of [A | B]
        bot = [sx_row, cnt, sy_row]                         # row d of [A | B]
        if pad > 0:
            top.append(jnp.zeros((bt, d, pad), jnp.float32))
            bot.append(jnp.zeros((bt, 1, pad), jnp.float32))
        g = jnp.concatenate([jnp.concatenate(top, axis=-1),
                             jnp.concatenate(bot, axis=-1)], axis=1)  # (bt,d1,padw)

        row = jax.lax.broadcasted_iota(jnp.int32, (d1, padw), 0)
        col = jax.lax.broadcasted_iota(jnp.int32, (d1, padw), 1)
        ridge = jnp.where(row == col, reg, jnp.float32(0.0))    # only A's diagonal
        g_ref[...] = g + ridge[None]


# ---------------------------------------------------------------------------
# n_samples < n_dim branch.
# ---------------------------------------------------------------------------
def _gram_kernel(reg_ref, x_ref, a_ref):
    # A = Xa Xa^T + reg*I = X X^T + 1 + reg*I ; output lane-padded to `npad`.
    x = x_ref[...]                      # (bt, n, d)
    bt, n, d = x.shape
    npad = a_ref.shape[-1]
    reg = reg_ref[0, 0]
    xk = x
    if npad > n:                        # pad RHS rows -> lane-dense (n, npad) result
        xk = jnp.concatenate(
            [x, jnp.zeros((bt, npad - n, d), jnp.float32)], axis=1)
    g = jnp.einsum('bnd,bkd->bnk', x, xk, preferred_element_type=jnp.float32)
    row = jax.lax.broadcasted_iota(jnp.int32, (n, npad), 0)
    col = jax.lax.broadcasted_iota(jnp.int32, (n, npad), 1)
    ridge = jnp.where(row == col, reg, jnp.float32(0.0))
    a_ref[...] = g + jnp.float32(1.0) + ridge[None]


def _xt_temp_kernel(x_ref, t_ref, w_ref):
    # weights = Xa^T temp = [X^T temp ; sum_n temp] ; output lane-padded.
    x = x_ref[...]                      # (bt, n, d)
    t = t_ref[...]                      # (bt, n, m)
    bt, n, d = x.shape
    m = t.shape[-1]
    mpad = w_ref.shape[-1]
    if mpad > m:
        t = jnp.concatenate(
            [t, jnp.zeros((bt, n, mpad - m), jnp.float32)], axis=-1)
    top = jnp.einsum('bnd,bnm->bdm', x, t, preferred_element_type=jnp.float32)
    bias = jnp.sum(t, axis=1, keepdims=True)
    w_ref[...] = jnp.concatenate([top, bias], axis=1)


# ---------------------------------------------------------------------------
# Wrapper == RidgeRegressor.forward
# ---------------------------------------------------------------------------
def ridge_regressor_forward(reprs, x, lam, reg_coeff=None, *, nt_cap=None):
    """reprs: (B, n_samples, n_dim), x: (B, n_samples, n_out), lam: scalar param.
    Returns (w, b) with w: (B, n_dim, n_out), b: (B, 1, n_out)."""
    if reg_coeff is None:
        reg_coeff = jax.nn.softplus(jnp.asarray(lam, jnp.float32))   # self.reg_coeff()

    B, n, d = reprs.shape
    m = x.shape[-1]
    d1 = d + 1

    Xf = reprs.astype(jnp.float32)
    Yf = x.astype(jnp.float32)
    reg_arr = jnp.asarray(reg_coeff, jnp.float32).reshape(1, 1)
    smem_spec = pl.BlockSpec(memory_space=pltpu.MemorySpace.SMEM)

    vmem_limit, tile_budget, cores = _tpu_budget()

    if n >= d:
        # ---- G = [Xa^T Xa + reg*I | Xa^T Y | pad], lane-dense 128-wide slab --
        padw = _round_up(d1 + m, 128)
        bt = _pick_batch_tile(B, max_bt=8, num_cores=cores)
        # Lane-dense streaming: the sample axis goes to lanes, padded to a
        # multiple of 128 (padded samples are zero -> contribute nothing; the
        # 1^T 1 count uses the true n).
        n_pad = _round_up(n, 128)
        nt = _pick_n_tile(n_pad, bt, d, m, tile_budget, cap=nt_cap)
        Xt = jnp.swapaxes(Xf, 1, 2)                         # (B, d, n)
        Yt = jnp.swapaxes(Yf, 1, 2)                         # (B, m, n)
        if n_pad != n:
            Xt = jnp.pad(Xt, ((0, 0), (0, 0), (0, n_pad - n)))
            Yt = jnp.pad(Yt, ((0, 0), (0, 0), (0, n_pad - n)))

        kernel = functools.partial(_normal_eq_kernel, n_true=n)
        G = pl.pallas_call(
            kernel,
            out_shape=jax.ShapeDtypeStruct((B, d1, padw), jnp.float32),
            grid=(B // bt, n_pad // nt),
            in_specs=[smem_spec,
                      pl.BlockSpec((bt, d, nt), lambda b, k: (b, 0, k)),
                      pl.BlockSpec((bt, m, nt), lambda b, k: (b, 0, k))],
            out_specs=pl.BlockSpec((bt, d1, padw), lambda b, k: (b, 0, 0)),
            scratch_shapes=[pltpu.VMEM((bt, d, d), jnp.float32),
                            pltpu.VMEM((bt, d, m), jnp.float32),
                            pltpu.VMEM((bt, d, 1), jnp.float32),
                            pltpu.VMEM((bt, m, 1), jnp.float32)],
            compiler_params=pltpu.CompilerParams(
                dimension_semantics=("parallel", "arbitrary"),
                vmem_limit_bytes=vmem_limit),
        )(reg_arr, Xt, Yt)
        A = G[:, :, :d1]
        Bm = G[:, :, d1:d1 + m]
        # TODO(synk): no Pallas LU/Cholesky primitive; the tiny batched
        # (d+1)x(d+1) solve stays in plain JAX (mirrors np.linalg.solve in the
        # PyTorch reference).  Switch to Cholesky if this ever dominates.
        weights = jnp.linalg.solve(A, Bm)                   # (B, d1, m)
    else:
        # ---- underdetermined: A = Xa Xa^T + reg*I ; weights = Xa^T temp ------
        bt = _pick_batch_tile(B, max_bt=32, num_cores=cores)
        npad = _round_up(n, 128)
        Apad = pl.pallas_call(
            _gram_kernel,
            out_shape=jax.ShapeDtypeStruct((B, n, npad), jnp.float32),
            grid=(B // bt,),
            in_specs=[smem_spec,
                      pl.BlockSpec((bt, n, d), lambda b: (b, 0, 0))],
            out_specs=pl.BlockSpec((bt, n, npad), lambda b: (b, 0, 0)),
            compiler_params=pltpu.CompilerParams(
                dimension_semantics=("parallel",),
                vmem_limit_bytes=vmem_limit),
        )(reg_arr, Xf)
        A = Apad[:, :, :n]
        temp = jnp.linalg.solve(A, Yf)                      # (B, n, m)
        mpad = _round_up(m, 128)
        Wpad = pl.pallas_call(
            _xt_temp_kernel,
            out_shape=jax.ShapeDtypeStruct((B, d1, mpad), jnp.float32),
            grid=(B // bt,),
            in_specs=[pl.BlockSpec((bt, n, d), lambda b: (b, 0, 0)),
                      pl.BlockSpec((bt, n, m), lambda b: (b, 0, 0))],
            out_specs=pl.BlockSpec((bt, d1, mpad), lambda b: (b, 0, 0)),
            compiler_params=pltpu.CompilerParams(
                dimension_semantics=("parallel",),
                vmem_limit_bytes=vmem_limit),
        )(Xf, temp)
        weights = Wpad[:, :, :m]                            # (B, d1, m)

    return weights[:, :-1], weights[:, -1:]


if __name__ == "__main__":
    key = jax.random.PRNGKey(0)
    k1, k2, k3, k4, k5, k6 = jax.random.split(key, 6)

    lam = jnp.asarray(0.0, jnp.float32)                     # lambda_init = 0.0
    reg = jax.nn.softplus(lam)

    def _ref_overdetermined(X, Y):
        Bsz, nn, _ = X.shape
        Xa = jnp.concatenate([X, jnp.ones((Bsz, nn, 1), jnp.float32)], axis=-1)
        A = jnp.einsum('bni,bnj->bij', Xa, Xa) + reg * jnp.eye(
            Xa.shape[-1], dtype=jnp.float32)
        Bmat = jnp.einsum('bni,bnm->bim', Xa, Y)
        return jnp.linalg.solve(A, Bmat)

    # --- branch 1a: n_samples >= n_dim, single n-tile -----------------------
    B, n, d, m = 2, 16, 8, 4
    reprs = jax.random.normal(k1, (B, n, d), dtype=jnp.float32)
    xy = jax.random.normal(k2, (B, n, m), dtype=jnp.float32)
    w, b = ridge_regressor_forward(reprs, xy, lam)
    jax.block_until_ready((w, b))
    w_full = _ref_overdetermined(reprs, xy)
    assert w.shape == (B, d, m) and b.shape == (B, 1, m)
    assert jnp.allclose(w, w_full[:, :-1], atol=1e-3, rtol=1e-3)
    assert jnp.allclose(b, w_full[:, -1:], atol=1e-3, rtol=1e-3)

    # --- branch 1b: n not a multiple of 128, multi-step reduction over n ----
    Bq, nq, dq, mq = 2, 272, 8, 4       # pads to 384; nt_cap=128 -> 3 k-steps
    reprsq = jax.random.normal(k3, (Bq, nq, dq), dtype=jnp.float32)
    xyq = jax.random.normal(k4, (Bq, nq, mq), dtype=jnp.float32)
    wq, bq = ridge_regressor_forward(reprsq, xyq, lam, nt_cap=128)
    jax.block_until_ready((wq, bq))
    w_fullq = _ref_overdetermined(reprsq, xyq)
    assert wq.shape == (Bq, dq, mq) and bq.shape == (Bq, 1, mq)
    assert jnp.allclose(wq, w_fullq[:, :-1], atol=2e-2, rtol=2e-2)
    assert jnp.allclose(bq, w_fullq[:, -1:], atol=2e-2, rtol=2e-2)

    # --- branch 2: n_samples < n_dim (underdetermined) ----------------------
    B2, n2, d2, m2 = 2, 4, 8, 3
    reprs2 = jax.random.normal(k5, (B2, n2, d2), dtype=jnp.float32)
    xy2 = jax.random.normal(k6, (B2, n2, m2), dtype=jnp.float32)
    w2, b2 = ridge_regressor_forward(reprs2, xy2, lam)
    jax.block_until_ready((w2, b2))
    Xa2 = jnp.concatenate([reprs2, jnp.ones((B2, n2, 1), jnp.float32)], axis=-1)
    A2 = jnp.einsum('bni,bki->bnk', Xa2, Xa2) + reg * jnp.eye(n2, dtype=jnp.float32)
    temp2 = jnp.linalg.solve(A2, xy2)
    w_full2 = jnp.einsum('bni,bnm->bim', Xa2, temp2)
    assert w2.shape == (B2, d2, m2) and b2.shape == (B2, 1, m2)
    assert jnp.allclose(w2, w_full2[:, :-1], atol=1e-3, rtol=1e-3)
    assert jnp.allclose(b2, w_full2[:, -1:], atol=1e-3, rtol=1e-3)

    print("KERNEL_OK")
</pallas_src>

<mosaic_0001>
module attributes {stable_mosaic.version = 11 : i64} {
  func.func @_normal_eq_kernel(%arg0: i32, %arg1: i32, %arg2: memref<1x1xf32, #tpu.memory_space<smem>>, %arg3: memref<2x8x128xf32, #tpu.memory_space<vmem>>, %arg4: memref<2x4x128xf32, #tpu.memory_space<vmem>>, %arg5: memref<2x9x128xf32, #tpu.memory_space<vmem>>, %arg6: memref<2x8x8xf32, #tpu.memory_space<vmem>>, %arg7: memref<2x8x4xf32, #tpu.memory_space<vmem>>, %arg8: memref<2x8x1xf32, #tpu.memory_space<vmem>>, %arg9: memref<2x4x1xf32, #tpu.memory_space<vmem>>) attributes {dimension_semantics = [#tpu.dimension_semantics<parallel>, #tpu.dimension_semantics<arbitrary>], iteration_bounds = array<i64: 1, 1>, scalar_prefetch = 0 : i64, scratch_operands = 4 : i64, tpu.core_type = #tpu.core_type<tc>, window_params = [{transform_indices = @transform_0, window_bounds = array<i64: 1, 1>}, {transform_indices = @transform_1, window_bounds = array<i64: 2, 8, 128>}, {transform_indices = @transform_2, window_bounds = array<i64: 2, 4, 128>}, {transform_indices = @transform_3, window_bounds = array<i64: 2, 9, 128>}]} {
    %c0_i32 = arith.constant 0 : i32
    %0 = arith.cmpi eq, %arg1, %c0_i32 : i32
    %1 = arith.extui %0 : i1 to i32
    %c0_i32_0 = arith.constant 0 : i32
    %2 = arith.cmpi ne, %1, %c0_i32_0 : i32
    scf.if %2 {
      %cst_35 = arith.constant 0.000000e+00 : f32
      %26 = vector.broadcast %cst_35 : f32 to vector<2x8x8xf32>
      %c0_36 = arith.constant 0 : index
      %c0_37 = arith.constant 0 : index
      %c0_38 = arith.constant 0 : index
      %27 = vector.load %arg6[%c0_36, %c0_37, %c0_38] : memref<2x8x8xf32, #tpu.memory_space<vmem>>, vector<2x8x8xf32>
      tpu.vector_store %arg6[%c0_36, %c0_37, %c0_38], %26 {strides = array<i32>} : memref<2x8x8xf32, #tpu.memory_space<vmem>>, vector<2x8x8xf32>,
      %cst_39 = arith.constant 0.000000e+00 : f32
      %28 = vector.broadcast %cst_39 : f32 to vector<2x8x4xf32>
      %c0_40 = arith.constant 0 : index
      %c0_41 = arith.constant 0 : index
      %c0_42 = arith.constant 0 : index
      %29 = vector.load %arg7[%c0_40, %c0_41, %c0_42] : memref<2x8x4xf32, #tpu.memory_space<vmem>>, vector<2x8x4xf32>
      tpu.vector_store %arg7[%c0_40, %c0_41, %c0_42], %28 {strides = array<i32>} : memref<2x8x4xf32, #tpu.memory_space<vmem>>, vector<2x8x4xf32>,
      %cst_43 = arith.constant 0.000000e+00 : f32
      %30 = vector.broadcast %cst_43 : f32 to vector<2x8x1xf32>
      %c0_44 = arith.constant 0 : index
      %c0_45 = arith.constant 0 : index
      %c0_46 = arith.constant 0 : index
      %31 = vector.load %arg8[%c0_44, %c0_45, %c0_46] : memref<2x8x1xf32, #tpu.memory_space<vmem>>, vector<2x8x1xf32>
      tpu.vector_store %arg8[%c0_44, %c0_45, %c0_46], %30 {strides = array<i32>} : memref<2x8x1xf32, #tpu.memory_space<vmem>>, vector<2x8x1xf32>,
      %cst_47 = arith.constant 0.000000e+00 : f32
      %32 = vector.broadcast %cst_47 : f32 to vector<2x4x1xf32>
      %c0_48 = arith.constant 0 : index
      %c0_49 = arith.constant 0 : index
      %c0_50 = arith.constant 0 : index
      %33 = vector.load %arg9[%c0_48, %c0_49, %c0_50] : memref<2x4x1xf32, #tpu.memory_space<vmem>>, vector<2x4x1xf32>
      tpu.vector_store %arg9[%c0_48, %c0_49, %c0_50], %32 {strides = array<i32>} : memref<2x4x1xf32, #tpu.memory_space<vmem>>, vector<2x4x1xf32>,
    } else {
    }
    %c0 = arith.constant 0 : index
    %c0_1 = arith.constant 0 : index
    %c0_2 = arith.constant 0 : index
    %3 = vector.load %arg3[%c0, %c0_1, %c0_2] : memref<2x8x128xf32, #tpu.memory_space<vmem>>, vector<2x8x128xf32>
    %c0_3 = arith.constant 0 : index
    %c0_4 = arith.constant 0 : index
    %c0_5 = arith.constant 0 : index
    %4 = vector.load %arg4[%c0_3, %c0_4, %c0_5] : memref<2x4x128xf32, #tpu.memory_space<vmem>>, vector<2x4x128xf32>
    %c0_6 = arith.constant 0 : index
    %c0_7 = arith.constant 0 : index
    %c0_8 = arith.constant 0 : index
    %5 = vector.load %arg6[%c0_6, %c0_7, %c0_8] : memref<2x8x8xf32, #tpu.memory_space<vmem>>, vector<2x8x8xf32>
    "tpu.trace_start"() <{level = 10 : i32, message = "bin,bjn->bij"}> : () -> ()
    %cst = arith.constant dense<0.000000e+00> : vector<2x8x8xf32>
    %6 = tpu.matmul %3, %3, %cst {dimension_numbers = #tpu.dot_dimension_numbers<[2], [2], [1], [1], [0, 0, 0, 1, 1, 1], [0], [0]>} : vector<2x8x128xf32>, vector<2x8x128xf32>, vector<2x8x8xf32> -> vector<2x8x8xf32>
    "tpu.trace_stop"() : () -> ()
    %7 = arith.addf %5, %6 : vector<2x8x8xf32>
    %c0_9 = arith.constant 0 : index
    %c0_10 = arith.constant 0 : index
    %c0_11 = arith.constant 0 : index
    %8 = vector.load %arg6[%c0_9, %c0_10, %c0_11] : memref<2x8x8xf32, #tpu.memory_space<vmem>>, vector<2x8x8xf32>
    tpu.vector_store %arg6[%c0_9, %c0_10, %c0_11], %7 {strides = array<i32>} : memref<2x8x8xf32, #tpu.memory_space<vmem>>, vector<2x8x8xf32>,
    %c0_12 = arith.constant 0 : index
    %c0_13 = arith.constant 0 : index
    %c0_14 = arith.constant 0 : index
    %9 = vector.load %arg7[%c0_12, %c0_13, %c0_14] : memref<2x8x4xf32, #tpu.memory_space<vmem>>, vector<2x8x4xf32>
    "tpu.trace_start"() <{level = 10 : i32, message = "bin,bjn->bij"}> : () -> ()
    %cst_15 = arith.constant dense<0.000000e+00> : vector<2x8x4xf32>
    %10 = tpu.matmul %3, %4, %cst_15 {dimension_numbers = #tpu.dot_dimension_numbers<[2], [2], [1], [1], [0, 0, 0, 1, 1, 1], [0], [0]>} : vector<2x8x128xf32>, vector<2x4x128xf32>, vector<2x8x4xf32> -> vector<2x8x4xf32>
    "tpu.trace_stop"() : () -> ()
    %11 = arith.addf %9, %10 : vector<2x8x4xf32>
    %c0_16 = arith.constant 0 : index
    %c0_17 = arith.constant 0 : index
    %c0_18 = arith.constant 0 : index
    %12 = vector.load %arg7[%c0_16, %c0_17, %c0_18] : memref<2x8x4xf32, #tpu.memory_space<vmem>>, vector<2x8x4xf32>
    tpu.vector_store %arg7[%c0_16, %c0_17, %c0_18], %11 {strides = array<i32>} : memref<2x8x4xf32, #tpu.memory_space<vmem>>, vector<2x8x4xf32>,
    %c0_19 = arith.constant 0 : index
    %c0_20 = arith.constant 0 : index
    %c0_21 = arith.constant 0 : index
    %13 = vector.load %arg8[%c0_19, %c0_20, %c0_21] : memref<2x8x1xf32, #tpu.memory_space<vmem>>, vector<2x8x1xf32>
    %cst_22 = arith.constant dense<0.000000e+00> : vector<2x8xf32>
    %14 = vector.multi_reduction <add>, %3, %cst_22 [2] : vector<2x8x128xf32> to vector<2x8xf32>
    %15 = vector.shape_cast %14 : vector<2x8xf32> to vector<2x8x1xf32>
    %16 = arith.addf %13, %15 : vector<2x8x1xf32>
    %c0_23 = arith.constant 0 : index
    %c0_24 = arith.constant 0 : index
    %c0_25 = arith.constant 0 : index
    %17 = vector.load %arg8[%c0_23, %c0_24, %c0_25] : memref<2x8x1xf32, #tpu.memory_space<vmem>>, vector<2x8x1xf32>
    tpu.vector_store %arg8[%c0_23, %c0_24, %c0_25], %16 {strides = array<i32>} : memref<2x8x1xf32, #tpu.memory_space<vmem>>, vector<2x8x1xf32>,
    %c0_26 = arith.constant 0 : index
    %c0_27 = arith.constant 0 : index
    %c0_28 = arith.constant 0 : index
    %18 = vector.load %arg9[%c0_26, %c0_27, %c0_28] : memref<2x4x1xf32, #tpu.memory_space<vmem>>, vector<2x4x1xf32>
    %cst_29 = arith.constant dense<0.000000e+00> : vector<2x4xf32>
    %19 = vector.multi_reduction <add>, %4, %cst_29 [2] : vector<2x4x128xf32> to vector<2x4xf32>
    %20 = vector.shape_cast %19 : vector<2x4xf32> to vector<2x4x1xf32>
    %21 = arith.addf %18, %20 : vector<2x4x1xf32>
    %c0_30 = arith.constant 0 : index
    %c0_31 = arith.constant 0 : index
    %c0_32 = arith.constant 0 : index
    %22 = vector.load %arg9[%c0_30, %c0_31, %c0_32] : memref<2x4x1xf32, #tpu.memory_space<vmem>>, vector<2x4x1xf32>
    tpu.vector_store %arg9[%c0_30, %c0_31, %c0_32], %21 {strides = array<i32>} : memref<2x4x1xf32, #tpu.memory_space<vmem>>, vector<2x4x1xf32>,
    %c0_i32_33 = arith.constant 0 : i32
    %23 = arith.cmpi eq, %arg1, %c0_i32_33 : i32
    %24 = arith.extui %23 : i1 to i32
    %c0_i32_34 = arith.constant 0 : i32
    %25 = arith.cmpi ne, %24, %c0_i32_34 : i32
    scf.if %25 {
      %c0_35 = arith.constant 0 : index
      %c0_36 = arith.constant 0 : index
      %26 = memref.load %arg2[%c0_35, %c0_36] : memref<1x1xf32, #tpu.memory_space<smem>>
      %c0_37 = arith.constant 0 : index
      %c0_38 = arith.constant 0 : index
      %c0_39 = arith.constant 0 : index
      %27 = vector.load %arg6[%c0_37, %c0_38, %c0_39] : memref<2x8x8xf32, #tpu.memory_space<vmem>>, vector<2x8x8xf32>
      %c0_40 = arith.constant 0 : index
      %c0_41 = arith.constant 0 : index
      %c0_42 = arith.constant 0 : index
      %28 = vector.load %arg7[%c0_40, %c0_41, %c0_42] : memref<2x8x4xf32, #tpu.memory_space<vmem>>, vector<2x8x4xf32>
      %c0_43 = arith.constant 0 : index
      %c0_44 = arith.constant 0 : index
      %c0_45 = arith.constant 0 : index
      %29 = vector.load %arg8[%c0_43, %c0_44, %c0_45] : memref<2x8x1xf32, #tpu.memory_space<vmem>>, vector<2x8x1xf32>
      %c0_46 = arith.constant 0 : index
      %c0_47 = arith.constant 0 : index
      %c0_48 = arith.constant 0 : index
      %30 = vector.load %arg9[%c0_46, %c0_47, %c0_48] : memref<2x4x1xf32, #tpu.memory_space<vmem>>, vector<2x4x1xf32>
      %31 = tpu.transpose %29, [0, 2, 1] : vector<2x8x1xf32> -> vector<2x1x8xf32>
      %32 = tpu.transpose %30, [0, 2, 1] : vector<2x4x1xf32> -> vector<2x1x4xf32>
      %cst_49 = arith.constant 1.600000e+01 : f32
      %33 = vector.broadcast %cst_49 : f32 to vector<2x1x1xf32>
      %cst_50 = arith.constant 0.000000e+00 : f32
      %34 = vector.broadcast %cst_50 : f32 to vector<2x8x115xf32>
      %cst_51 = arith.constant 0.000000e+00 : f32
      %35 = vector.broadcast %cst_51 : f32 to vector<2x1x115xf32>
      %36 = tpu.concatenate %27, %29, %28, %34 in 2 : vector<2x8x8xf32>, vector<2x8x1xf32>, vector<2x8x4xf32>, vector<2x8x115xf32> -> vector<2x8x128xf32>
      %37 = tpu.concatenate %31, %33, %32, %35 in 2 : vector<2x1x8xf32>, vector<2x1x1xf32>, vector<2x1x4xf32>, vector<2x1x115xf32> -> vector<2x1x128xf32>
      %38 = tpu.concatenate %36, %37 in 1 : vector<2x8x128xf32>, vector<2x1x128xf32> -> vector<2x9x128xf32>
      %39 = tpu.iota {dimensions = array<i32: 0>} : vector<9x128xi32>
      %40 = tpu.iota {dimensions = array<i32: 1>} : vector<9x128xi32>
      %41 = arith.cmpi eq, %39, %40 : vector<9x128xi32>
      %cst_52 = arith.constant 0.000000e+00 : f32
      %42 = vector.broadcast %26 : f32 to vector<9x128xf32>
      %43 = vector.broadcast %cst_52 : f32 to vector<9x128xf32>
      %44 = arith.select %41, %42, %43 : vector<9x128xi1>, vector<9x128xf32>
      %45 = vector.shape_cast %44 : vector<9x128xf32> to vector<1x9x128xf32>
      %46 = vector.broadcast %45 : vector<1x9x128xf32> to vector<2x9x128xf32>
      %47 = arith.addf %38, %46 : vector<2x9x128xf32>
      %c0_53 = arith.constant 0 : index
      %c0_54 = arith.constant 0 : index
      %c0_55 = arith.constant 0 : index
      %48 = vector.load %arg5[%c0_53, %c0_54, %c0_55] : memref<2x9x128xf32, #tpu.memory_space<vmem>>, vector<2x9x128xf32>
      tpu.vector_store %arg5[%c0_53, %c0_54, %c0_55], %47 {strides = array<i32>} : memref<2x9x128xf32, #tpu.memory_space<vmem>>, vector<2x9x128xf32>,
    } else {
    }
    return
  }
  func.func @transform_0(%arg0: i32, %arg1: i32) -> (i32, i32) {
    %c0_i32 = arith.constant 0 : i32
    %c0_i32_0 = arith.constant 0 : i32
    %c0_i32_1 = arith.constant 0 : i32
    return %c0_i32, %c0_i32_0 : i32, i32
  }
  func.func @transform_1(%arg0: i32, %arg1: i32) -> (i32, i32, i32) {
    %c0_i32 = arith.constant 0 : i32
    %c0_i32_0 = arith.constant 0 : i32
    return %arg0, %c0_i32, %arg1 : i32, i32, i32
  }
  func.func @transform_2(%arg0: i32, %arg1: i32) -> (i32, i32, i32) {
    %c0_i32 = arith.constant 0 : i32
    %c0_i32_0 = arith.constant 0 : i32
    return %arg0, %c0_i32, %arg1 : i32, i32, i32
  }
  func.func @transform_3(%arg0: i32, %arg1: i32) -> (i32, i32, i32) {
    %c0_i32 = arith.constant 0 : i32
    %c0_i32_0 = arith.constant 0 : i32
    %c0_i32_1 = arith.constant 0 : i32
    return %arg0, %c0_i32, %c0_i32_0 : i32, i32, i32
  }
}

</mosaic_0001>

<bundles_post_ra>
// kernel: tpu_custom_call.1
= control target key start
LH: loop header
LB: loop body
LE: loop exit
PB: predicated region body
PF: predicated region fallthrough
CT: control target
= control target key end

     0   :  { %9 = vsyncpa [#allocation8], 0  ;;  %s772_s0 = inlined_call_operand.<no memory space> [shape: f32[1,1], index: 0, kind: input, shape index: {}]   ;;  %s773_s1 = inlined_call_operand.hbm [shape: f32[2,8,128], index: 1, kind: input, shape index: {}]   ;;  %s774_s2 = inlined_call_operand.hbm [shape: f32[2,4,128], index: 2, kind: input, shape index: {}]   ;;  %s775_s3 = inlined_call_operand.vmem [shape: f32[2,9,128], index: 3, kind: output, shape index: {}]  }
   0x1   :  { %10 = vsyncpa [#allocation10], 0  ;;  %s669_s12 = smov [#allocation7]   ;;  %s621_s16 = scalar_lea.hbm %s773_s1, 256 }
   0x2   :  { %s18_s13 = sshll.u32 %s669_s12, 4  ;;  %p622_p0 = scmp.ne.s32.totalorder %s773_s1, %s621_s16  ;;  %s19_s13 = int_to_ptr.vmem [resolvable:$true] %s18_s13 }
   0x3   :  { %p625_p1 = scmp.lt.u32.totalorder %s621_s16, %s773_s1 }
   0x5   :  { %p627_p2 = pnand %p625_p1, %p622_p0 }
   0x7   :  { %630 = shalt.err (!%p627_p2)
}
   0x8   :  { %s631_s21 = scalar_lea.vmem %s19_s13, 256  ;;  %p636_p4 = scmp.lt.s32.totalorder %s19_s13, %s19_s13 }
   0x9   :  { %p632_p3 = scmp.ne.s32.totalorder %s19_s13, %s631_s21  ;;  %p637_p5 = scmp.lt.s32.totalorder %s631_s21, %s631_s21 }
   0xb   :  { %p638_p6 = por %p637_p5, %p636_p4 }
   0xd   :  { %p639_p7 = pnand %p638_p6, %p632_p3 }
   0xf   :  { %642 = shalt.err (!%p639_p7)
}
  0x10   :  { %s670_s22 = smov 128   ;;  %s671_s23 = smov 8  }
  0x11   :  { %24 = dma.hbm_to_vmem [thread:$0]  %s773_s1, 256, %s19_s13, [#allocation8], %s670_s22, %s670_s22, %s671_s23  }
  0x12   :  { %s672_s26 = smov [#allocation9]   ;;  %s643_s30 = scalar_lea.hbm %s774_s2, 128 }
  0x13   :  { %s30_s27 = sshll.u32 %s672_s26, 4  ;;  %p644_p8 = scmp.ne.s32.totalorder %s774_s2, %s643_s30  ;;  %s31_s27 = int_to_ptr.vmem [resolvable:$true] %s30_s27 }
  0x14   :  { %p647_p9 = scmp.lt.u32.totalorder %s643_s30, %s774_s2 }
  0x16   :  { %p649_p10 = pnand %p647_p9, %p644_p8 }
  0x18   :  { %652 = shalt.err (!%p649_p10)
}
  0x19   :  { %s653_s8 = scalar_lea.vmem %s31_s27, 128  ;;  %p658_p12 = scmp.lt.s32.totalorder %s31_s27, %s31_s27 }
  0x1a   :  { %p654_p11 = scmp.ne.s32.totalorder %s31_s27, %s653_s8  ;;  %p659_p13 = scmp.lt.s32.totalorder %s653_s8, %s653_s8 }
  0x1c   :  { %p660_p0 = por %p659_p13, %p658_p12 }
  0x1e   :  { %p661_p1 = pnand %p660_p0, %p654_p11 }
  0x20   :  { %664 = shalt.err (!%p661_p1)
}
  0x21   :  { %s673_s1 = smov 64   ;;  %s674_s9 = smov 4  }
  0x22   :  { %36 = dma.hbm_to_vmem [thread:$0]  %s774_s2, 128, %s31_s27, [#allocation10], %s673_s1, %s673_s1, %s674_s9  }
  0x23   :  { %665 = dma.done.wait [#allocation8], 256  }
  0x24   :  { %666 = vsyncadd [#allocation8], 4294967040 }
  0x25   :  { %667 = dma.done.wait [#allocation10], 128  }
  0x26   :  { %668 = vsyncadd [#allocation10], 4294967168  ;;  %vm53_vm0 = vcmask 7168   ;;  %v675_v0 = vmov 0.0   ;;  %vm676_vm1 = vmmov 0   ;;  %vm370_vm2 = vcmask 1043456  }
  0x27   :  { %592 = vmatprep.subr.mxu0 %v675_v0  ;;  %594 = vmatprep.mubr.msk.f32.mxu0 %vm676_vm1, %v675_v0  ;;  %54 = vst.msk [vmem:[#allocation4] sm:$0xff] %vm53_vm0, %v675_v0  ;;  %55 = vst.msk [vmem:[#allocation4 + $0x8] sm:$0xff] %vm53_vm0, %v675_v0  ;;  %v59_v1 = vld [vmem:[#allocation7] sm:$0xff]  ;;  %v61_v2 = vld [vmem:[#allocation9] sm:$0xf]  ;;  %vm56_vm3 = vcmask 3072   ;;  %v560_v45 = vlaneseq  ;;  %v567_v50 = vstv %s772_s0 }
  0x28   :  { %597 = vmatprep.subr.mxu1 %v675_v0  ;;  %599 = vmatprep.mubr.msk.f32.mxu1 %vm676_vm1, %v675_v0  ;;  %v60_v3 = vld [vmem:[#allocation7 + $0x8] sm:$0xff]  ;;  %v371_v4 = vsel %vm370_vm2, %v61_v2, 0.0  ;;  %v62_v5 = vld [vmem:[#allocation9 + $0x4] sm:$0xf]  ;;  %57 = vst.msk [vmem:[#allocation5] sm:$0xf] %vm56_vm3, %v675_v0 }
  0x29   :  { %359 = vadd.xlane.f32.xlu1 %v59_v1  ;;  %593 = vmatpush3.xpose.msra.mxu0 %v59_v1  ;;  %v374_v6 = vsel %vm370_vm2, %v62_v5, 0.0  ;;  %58 = vst.msk [vmem:[#allocation5 + $0x4] sm:$0xf] %vm56_vm3, %v675_v0  ;;  %vm47_vm4 = vcmask 64512   ;;  %vm50_vm5 = vcmask 31744   ;;  %s677_s2 = smov 9  }
  0x2a   :  { %372 = vadd.xlane.f32.xlu0 %v371_v4  ;;  %598 = vmatpush3.xpose.msra.mxu1 %v60_v3  ;;  %48 = vst.msk [vmem:[#allocation2] sm:$0xff] %vm47_vm4, %v675_v0  ;;  %49 = vst.msk [vmem:[#allocation2 + $0x8] sm:$0xff] %vm47_vm4, %v675_v0  ;;  %v561_v46 = vshrl.u32 %v560_v45, 7  ;;  %v564_v47 = vand.u32 127, %v560_v45  ;;  %vm540_vm7 = vcmask 72704   ;;  %vm543_vm8 = vcmask 105472  }
  0x2b   :  { %602 = vmatprep.subr.mxu0 %v675_v0  ;;  %607 = vmatprep.subr.mxu1 %v675_v0  ;;  %51 = vst.msk [vmem:[#allocation3] sm:$0xff] %vm50_vm5, %v675_v0  ;;  %52 = vst.msk [vmem:[#allocation3 + $0x8] sm:$0xff] %vm50_vm5, %v675_v0 }
  0x2c   :  { %595 = vmatmul.mubr.f32.vlgmr.msra.gmra.mrb[0].mxu0 %v59_v1  ;;  %vm565_vm6 = vcmp.eq.s32.totalorder %v561_v46, %v564_v47  ;;  %v562_v63 = vadd.s32 8, %v561_v46 }
  0x2d   :  { %361 = vadd.xlane.f32.xlu1 %v60_v3  ;;  %600 = vmatmul.mubr.f32.vlgmr.msra.gmra.mrb[0].mxu1 %v60_v3  ;;  %v568_v52 = vsel %vm565_vm6, %v567_v50, 0.0 }
  0x2e   :  { %375 = vadd.xlane.f32.xlu0 %v374_v6  ;;  %603 = vmatpush3.xpose.msra.mxu0 %v61_v2  ;;  %v357_v7 = vld [vmem:[#allocation4] sm:$0xff]  ;;  %v358_v12 = vld [vmem:[#allocation4 + $0x8] sm:$0xff]  ;;  %vm566_vm9 = vcmp.eq.s32.totalorder %v562_v63, %v564_v47 }
  0x2f   :  { %604 = vmatprep.mubr.msk.f32.mxu0 %vm676_vm1, %v675_v0  ;;  %608 = vmatpush3.xpose.msra.mxu1 %v62_v5  ;;  %v368_v8 = vld [vmem:[#allocation5] sm:$0xf]  ;;  %v569_v2 = vsel %vm566_vm9, %v567_v50, 0.0 }
  0x30   :  { %609 = vmatprep.mubr.msk.f32.mxu1 %vm676_vm1, %v675_v0  ;;  %v369_v14 = vld [vmem:[#allocation5 + $0x4] sm:$0xf] }
  0x31   :  { %605 = vmatmul.mubr.f32.vlgmr.msra.gmra.mrb[2].mxu0 %v59_v1  ;;  %v63_v23 = vld [vmem:[#allocation2] sm:$0xff]  ;;  %v64_v24 = vld [vmem:[#allocation2 + $0x8] sm:$0xff] }
  0x32   :  { %610 = vmatmul.mubr.f32.vlgmr.msra.gmra.mrb[2].mxu1 %v60_v3  ;;  %v210_v31 = vld [vmem:[#allocation3] sm:$0xff]  ;;  %v211_v32 = vld [vmem:[#allocation3 + $0x8] sm:$0xff] }
  0xb6   :  { %v360_v9 = vpop.xlane.xlu1 %359 }
  0xb7   :  { %v363_v10 = vadd.f32 %v360_v9, %v357_v7  ;;  %v373_v11 = vpop.xlane.xlu0 %372 }
  0xb8   :  { %v377_v13 = vadd.f32 %v373_v11, %v368_v8 }
  0xb9   :  { %366 = vst.msk [vmem:[#allocation4] sm:$0xff] %vm53_vm0, %v363_v10 }
  0xba   :  { %v362_v15 = vpop.xlane.xlu1 %361  ;;  %380 = vst.msk [vmem:[#allocation5] sm:$0xf] %vm56_vm3, %v377_v13 }
  0xbb   :  { %v364_v16 = vadd.f32 %v362_v15, %v358_v12  ;;  %v376_v17 = vpop.xlane.xlu0 %375 }
  0xbc   :  { %v378_v18 = vadd.f32 %v376_v17, %v369_v14 }
  0xbd   :  { %367 = vst.msk [vmem:[#allocation4 + $0x8] sm:$0xff] %vm53_vm0, %v364_v16 }
  0xbe   :  { %381 = vst.msk [vmem:[#allocation5 + $0x4] sm:$0xf] %vm56_vm3, %v378_v18 }
  0xc0   :  { %v390_v19 = vld [vmem:[#allocation4] sm:$0xff] }
  0xc1   :  { %524 = vrot.lane.b32.xlu0 %v390_v19, %s671_s23  ;;  %v392_v21 = vld [vmem:[#allocation5] sm:$0xf] }
  0xc4   :  { %v391_v20 = vld [vmem:[#allocation4 + $0x8] sm:$0xff] }
  0xc5   :  { %526 = vrot.lane.b32.xlu1 %v391_v20, %s671_s23  ;;  %v393_v22 = vld [vmem:[#allocation5 + $0x4] sm:$0xf] }
  0xdf   :  { %458 = vxpose.xlu0.b32.start.end [1/1] (short) (narrow) %v392_v21, 8 }
  0xee   :  { %490 = vxpose.xlu1.b32.start.end [1/1] (short) (narrow) %v393_v22, 8 }
  0xff   :  { %v131_v25 = vpop.f32.mrb[0].mxu0 }
 0x100   :  { %v205_v26 = vadd.f32 %v131_v25, %v63_v23  ;;  %v201_v27 = vpop.f32.mrb[0].mxu1  ;;  %v596_v28 = vpop.f32.mrb[1].mxu0 }
 0x101   :  { %v206_v29 = vadd.f32 %v201_v27, %v64_v24  ;;  %v601_v30 = vpop.f32.mrb[1].mxu1 }
 0x102   :  { %208 = vst.msk [vmem:[#allocation2] sm:$0xff] %vm47_vm4, %v205_v26 }
 0x103   :  { %209 = vst.msk [vmem:[#allocation2 + $0x8] sm:$0xff] %vm47_vm4, %v206_v29 }
 0x104   :  { %v278_v33 = vpop.f32.mrb[2].mxu0 }
 0x105   :  { %v352_v34 = vadd.f32 %v278_v33, %v210_v31  ;;  %v606_v35 = vpop.f32.mrb[3].mxu0  ;;  %v348_v36 = vpop.f32.mrb[2].mxu1 }
 0x106   :  { %v353_v37 = vadd.f32 %v348_v36, %v211_v32  ;;  %v611_v38 = vpop.f32.mrb[3].mxu1 }
 0x107   :  { %355 = vst.msk [vmem:[#allocation3] sm:$0xff] %vm50_vm5, %v352_v34 }
 0x108   :  { %356 = vst.msk [vmem:[#allocation3 + $0x8] sm:$0xff] %vm50_vm5, %v353_v37 }
 0x109   :  { %v386_v49 = vld [vmem:[#allocation2] sm:$0xff] }
 0x10a   :  { %v387_v54 = vld [vmem:[#allocation2 + $0x8] sm:$0xff] }
 0x10e   :  { %v388_v43 = vld [vmem:[#allocation3] sm:$0xff] }
 0x10f   :  { %v389_v44 = vld [vmem:[#allocation3 + $0x8] sm:$0xff] }
 0x133   :  { %v525_v39 = vpop.permute.xlu0 %524 }
 0x134   :  { %v538_v51 = vsel %vm47_vm4, %v386_v49, %v525_v39 }
 0x137   :  { %v527_v41 = vpop.permute.xlu1 %526 }
 0x138   :  { %v539_v58 = vsel %vm47_vm4, %v387_v54, %v527_v41 }
 0x15f   :  { %v474_v40 = vpop.trf.xlu0 }
 0x160   :  { %548 = vrot.lane.b32.xlu0 %v474_v40, %s677_s2 }
 0x16e   :  { %v506_v42 = vpop.trf.xlu1 }
 0x16f   :  { %550 = vrot.lane.b32.xlu1 %v506_v42, %s677_s2 }
 0x173   :  { %532 = vrot.lane.b32.xlu1 %v388_v43, %s677_s2 }
 0x177   :  { %534 = vrot.lane.b32.xlu1 %v389_v44, %s677_s2 }
 0x17e   :  { %394 = vxpose.xlu0.b32.start.end [1/1] (short) (narrow) %v390_v19, 8 }
 0x1a0   :  { %426 = vxpose.xlu1.b32.start.end [1/1] (short) (narrow) %v391_v20, 8 }
 0x1d2   :  { %v549_v0 = vpop.permute.xlu0 %548 }
 0x1e1   :  { %v551_v48 = vpop.permute.xlu1 %550 }
 0x1e5   :  { %v533_v53 = vpop.permute.xlu1 %532 }
 0x1e6   :  { %v541_v55 = vsel %vm540_vm7, %v538_v51, %v533_v53 }
 0x1e7   :  { %v544_v56 = vsel %vm543_vm8, %v541_v55, 0.0 }
 0x1e8   :  { %v570_v57 = vadd.f32 %v568_v52, %v544_v56 }
 0x1e9   :  { %v535_v59 = vpop.permute.xlu1 %534 }
 0x1ea   :  { %574 = vst [vmem:[%s775_s3] sm:$0xff] %v570_v57  ;;  %v542_v60 = vsel %vm540_vm7, %v539_v58, %v535_v59 }
 0x1eb   :  { %v545_v61 = vsel %vm543_vm8, %v542_v60, 0.0 }
 0x1ec   :  { %v572_v62 = vadd.f32 %v568_v52, %v545_v61 }
 0x1ee   :  { %576 = vst [vmem:[%s775_s3 + $0x10] sm:$0xff] %v572_v62 }
 0x1fe   :  { %v410_v1 = vpop.trf.xlu0 }
 0x1ff   :  { %v554_v3 = vsel %vm47_vm4, %v410_v1, 16.0 }
 0x200   :  { %v556_v4 = vsel %vm540_vm7, %v554_v3, %v549_v0 }
 0x201   :  { %v558_v5 = vsel %vm543_vm8, %v556_v4, 0.0 }
 0x202   :  { %v571_v6 = vadd.f32 %v569_v2, %v558_v5 }
 0x204   :  { %575 = vst [vmem:[%s775_s3 + $0x8] sm:$0x1] %v571_v6 }
 0x220   :  { %v442_v7 = vpop.trf.xlu1 }
 0x221   :  { %v555_v8 = vsel %vm47_vm4, %v442_v7, 16.0 }
 0x222   :  { %v557_v9 = vsel %vm540_vm7, %v555_v8, %v551_v48 }
 0x223   :  { %v559_v10 = vsel %vm543_vm8, %v557_v9, 0.0 }
 0x224   :  { %v573_v11 = vadd.f32 %v569_v2, %v559_v10 }
 0x226   :  { %577 = vst [vmem:[%s775_s3 + $0x18] sm:$0x1] %v573_v11 }
 0x227   :  { %582 = vsyncpa [#allocation8], 1 }
 0x228   :  { %583 = vsyncpa [#allocation10], 1 }

</bundles_post_ra>
